<compile_context>
chip_gen: v5e
topology: v5e:2x2
jax: 0.10.0
libtpu: 0.0.40
codegen_flags: <defaults>
</compile_context>

<pallas_src>
import functools

import jax
import jax.numpy as jnp
from jax.experimental import pallas as pl
from jax.experimental.pallas import tpu as pltpu


# ----------------------------------------------------------------------------
# helpers traced inside the kernels
# ----------------------------------------------------------------------------
def _dot(a, b):
    return jnp.dot(a, b, preferred_element_type=jnp.float32)


def _embed(x, we1, be1, we2, be2):
    """embedding_mlp: two fc+tanh layers. bf16 MXU operands, f32 math."""
    h = jnp.tanh(_dot(x, we1) + be1)
    return jnp.tanh(_dot(h.astype(jnp.bfloat16), we2) + be2)


def _batch_selector(b_blk, m_blk, n_neighbors, dtype):
    """sel[p, r] = 1 iff row r belongs to block-local batch p.
    Rows are contiguous per batch (r // N == p); built with iota compares
    (no integer div, no HBM traffic)."""
    row = jax.lax.broadcasted_iota(jnp.int32, (b_blk, m_blk), 1)
    bat = jax.lax.broadcasted_iota(jnp.int32, (b_blk, m_blk), 0)
    lo = bat * n_neighbors
    return jnp.logical_and(row >= lo, row < lo + n_neighbors).astype(dtype)


# ----------------------------------------------------------------------------
# pass 1: per-batch mean of the neighbor embeddings -> (B, H)
# ----------------------------------------------------------------------------
def _mean_kernel(n_neighbors, x_ref, we1_ref, be1_ref, we2_ref, be2_ref,
                 mean_ref):
    emb = _embed(x_ref[...], we1_ref[...], be1_ref[...],
                 we2_ref[...], be2_ref[...])                     # (M_blk, H) f32
    m_blk = emb.shape[0]
    b_blk = m_blk // n_neighbors
    sel = _batch_selector(b_blk, m_blk, n_neighbors, jnp.float32)
    mean_ref[...] = _dot(sel, emb) * (1.0 / n_neighbors)         # (B_blk, H)


# ----------------------------------------------------------------------------
# pass 2: value MLP + attention MLP + softmax + weighted sum -> (B, H)
# ----------------------------------------------------------------------------
def _attn_kernel(n_neighbors,
                 x_ref, mrep_ref,
                 we1_ref, be1_ref, we2_ref, be2_ref,
                 wv1a1_ref, bv1_ref, wv2_ref, bv2_ref,
                 wa1m_ref, ba1_ref, wa2_ref, ba2_ref,
                 wa3_ref, ba3_ref,
                 out_ref):
    bf16 = jnp.bfloat16
    hidden = out_ref.shape[1]

    # embedding_mlp (recomputed: 2 tiny matmuls < HBM round trip of emb)
    emb = _embed(x_ref[...], we1_ref[...], be1_ref[...],
                 we2_ref[...], be2_ref[...])                     # (M_blk, H) f32
    emb_b = emb.astype(bf16)

    # fused first layers: value-MLP L1 and attention-MLP L1 (emb half) share emb
    both = _dot(emb_b, wv1a1_ref[...])                           # (M_blk, 2H)
    v1 = jnp.tanh(both[:, :hidden] + bv1_ref[...])
    a1 = jnp.tanh(both[:, hidden:] + _dot(mrep_ref[...], wa1m_ref[...])
                  + ba1_ref[...])

    val = jnp.tanh(_dot(v1.astype(bf16), wv2_ref[...]) + bv2_ref[...])
    a2 = jnp.tanh(_dot(a1.astype(bf16), wa2_ref[...]) + ba2_ref[...])

    # final attention layer (H -> 1) as a lane reduction + CUSTOM_LINEAR clip
    logit = jnp.sum(a2 * wa3_ref[...], axis=-1, keepdims=True) + ba3_ref[...]
    logit = jnp.clip(logit, 0.0, 1.0)
    # logits in [0,1] => exp is stable without max subtraction (== torch softmax)
    e = jnp.exp(logit)                                           # (M_blk, 1)

    # per-batch softmax normalization + weighted sum over the N contiguous rows
    # of each batch, in one reduction matmul (extra lane carries the denominator)
    m_blk = emb.shape[0]
    b_blk = m_blk // n_neighbors
    sel = _batch_selector(b_blk, m_blk, n_neighbors, jnp.float32)
    red = _dot(sel, jnp.concatenate([e * val, e], axis=1))       # (B_blk, H+1)
    out_ref[...] = red[:, :hidden] * pl.reciprocal(red[:, hidden:], approx=True)


# ----------------------------------------------------------------------------
# wrapper
# ----------------------------------------------------------------------------
def _pick_batch_block(batch, n_neighbors, max_rows):
    """Largest batch block whose row count fits `max_rows`.  Blocks smaller
    than the full batch must be a multiple of 8 (sublane constraint on the
    (B_blk, H) output tile)."""
    if batch * n_neighbors <= max_rows:
        return batch
    cands = [b for b in range(8, batch, 8)
             if batch % b == 0 and b * n_neighbors <= max_rows]
    return max(cands) if cands else batch


def quad_neighborhood_attention(self_obs, obs, params, *,
                                self_obs_dim, neighbor_obs_dim,
                                neighbor_hidden_size, num_use_neighbor_obs,
                                max_rows_per_tile=2048):
    f32, bf16 = jnp.float32, jnp.bfloat16
    B = self_obs.shape[0]
    N = num_use_neighbor_obs
    H = neighbor_hidden_size
    M = B * N
    all_neighbor_obs_size = neighbor_obs_dim * N

    # --- obs slicing / repeat / concat exactly as in the PyTorch forward ---
    obs_neighbors = obs[:, self_obs_dim:self_obs_dim + all_neighbor_obs_size]
    obs_neighbors = obs_neighbors.reshape(M, neighbor_obs_dim)   # row j -> batch j // N
    self_obs_repeat = jnp.tile(self_obs, (N, 1))                 # torch .repeat: row j -> batch j % B
    x = jnp.concatenate([self_obs_repeat, obs_neighbors], axis=1).astype(bf16)
    d_in = x.shape[1]

    b_blk = _pick_batch_block(B, N, max_rows_per_tile)
    n_tiles = B // b_blk
    m_blk = b_blk * N

    # --- weights: bf16 MXU operands, f32 biases; fuse wv1 with wa1's emb half ---
    we1 = params["we1"].astype(bf16)
    we2 = params["we2"].astype(bf16)
    wv1a1 = jnp.concatenate([params["wv1"], params["wa1"][:H, :]], axis=1).astype(bf16)
    wv2 = params["wv2"].astype(bf16)
    wa1m = params["wa1"][H:, :].astype(bf16)
    wa2 = params["wa2"].astype(bf16)
    wa3 = params["wa3"].reshape(1, H).astype(f32)    # used on the VPU, stays f32
    be1, be2 = params["be1"], params["be2"]
    bv1, bv2 = params["bv1"], params["bv2"]
    ba1, ba2 = params["ba1"], params["ba2"]
    ba3 = params["ba3"].reshape(1, 1)

    row_spec = lambda cols: pl.BlockSpec((m_blk, cols), lambda i: (i, 0))
    full_spec = lambda a: pl.BlockSpec(a.shape, lambda i: (0, 0))
    batch_spec = pl.BlockSpec((b_blk, H), lambda i: (i, 0))
    parallel = pltpu.CompilerParams(dimension_semantics=("parallel",))

    # --- pass 1: per-batch mean of neighbor embeddings.  Needed globally
    #     because of torch's `.repeat(N, 1)`: mean_rep row j = mean[j % B]. ---
    mean = pl.pallas_call(
        functools.partial(_mean_kernel, N),
        grid=(n_tiles,),
        in_specs=[row_spec(d_in), full_spec(we1), full_spec(be1),
                  full_spec(we2), full_spec(be2)],
        out_specs=batch_spec,
        out_shape=jax.ShapeDtypeStruct((B, H), f32),
        compiler_params=parallel,
    )(x, we1, be1, we2, be2)

    mean_rep = jnp.tile(mean, (N, 1)).astype(bf16)   # row j -> mean[j % B]

    # --- pass 2: value MLP, attention MLP, softmax, weighted sum ---
    return pl.pallas_call(
        functools.partial(_attn_kernel, N),
        grid=(n_tiles,),
        in_specs=[row_spec(d_in), row_spec(H),
                  full_spec(we1), full_spec(be1), full_spec(we2), full_spec(be2),
                  full_spec(wv1a1), full_spec(bv1), full_spec(wv2), full_spec(bv2),
                  full_spec(wa1m), full_spec(ba1), full_spec(wa2), full_spec(ba2),
                  full_spec(wa3), full_spec(ba3)],
        out_specs=batch_spec,
        out_shape=jax.ShapeDtypeStruct((B, H), f32),
        compiler_params=parallel,
    )(x, mean_rep,
      we1, be1, we2, be2, wv1a1, bv1, wv2, bv2, wa1m, ba1, wa2, ba2, wa3, ba3)


# ----------------------------------------------------------------------------
# deterministic parameter init (synthetic; shapes follow the module __init__).
# Linear weights are (in_features, out_features):  y = x @ W + b.
# ----------------------------------------------------------------------------
def init_params(key, self_obs_dim, neighbor_obs_dim, H):
    din = self_obs_dim + neighbor_obs_dim
    ks = jax.random.split(key, 14)

    def w(k, i, o):
        return jax.random.normal(k, (i, o), jnp.float32) / jnp.sqrt(float(i))

    def b(k, o):
        return jax.random.normal(k, (1, o), jnp.float32) * 0.01

    return dict(
        we1=w(ks[0], din, H), be1=b(ks[1], H),
        we2=w(ks[2], H, H), be2=b(ks[3], H),
        wv1=w(ks[4], H, H), bv1=b(ks[5], H),
        wv2=w(ks[6], H, H), bv2=b(ks[7], H),
        wa1=w(ks[8], 2 * H, H), ba1=b(ks[9], H),
        wa2=w(ks[10], H, H), ba2=b(ks[11], H),
        wa3=w(ks[12], H, 1), ba3=b(ks[13], 1),
    )


# ----------------------------------------------------------------------------
# pure-JAX reference reproducing the PyTorch forward (for validation).
# If matmul_dtype is set, the large matmul operands are cast to it (mirroring
# the kernel's bf16 MXU use); the final (H->1) layer stays f32 in both.
# ----------------------------------------------------------------------------
def reference(self_obs, obs, p, self_obs_dim, dn, H, N, matmul_dtype=None):
    cast = (lambda a: a) if matmul_dtype is None else (lambda a: a.astype(matmul_dtype))
    mm = lambda a, w: jnp.dot(cast(a), cast(w), preferred_element_type=jnp.float32)

    B = self_obs.shape[0]
    obs_nb = obs[:, self_obs_dim:self_obs_dim + dn * N].reshape(-1, dn)
    x = jnp.concatenate([jnp.tile(self_obs, (N, 1)), obs_nb], axis=1)
    emb = jnp.tanh(mm(jnp.tanh(mm(x, p["we1"]) + p["be1"]), p["we2"]) + p["be2"])
    val = jnp.tanh(mm(jnp.tanh(mm(emb, p["wv1"]) + p["bv1"]), p["wv2"]) + p["bv2"])
    mean = emb.reshape(B, -1, H).mean(axis=1)
    att_in = jnp.concatenate([emb, jnp.tile(mean, (N, 1))], axis=1)
    a = jnp.tanh(mm(jnp.tanh(mm(att_in, p["wa1"]) + p["ba1"]), p["wa2"]) + p["ba2"])
    logit = jnp.clip(jnp.dot(a, p["wa3"]) + p["ba3"], 0.0, 1.0)   # CUSTOM_LINEAR
    w = jax.nn.softmax(logit.reshape(B, -1), axis=1).reshape(-1, 1)
    return (w * val).reshape(B, -1, H).sum(axis=1)


if __name__ == "__main__":
    # small shapes consistent with the module
    B = 16                     # batch_size
    SELF_OBS_DIM = 18
    NEIGHBOR_OBS_DIM = 6
    H = 32                     # neighbor_hidden_size
    N = 6                      # num_use_neighbor_obs
    OBS_DIM = SELF_OBS_DIM + NEIGHBOR_OBS_DIM * N + 4   # extra trailing obs

    key = jax.random.PRNGKey(0)
    k_self, k_obs, k_params = jax.random.split(key, 3)
    self_obs = jax.random.normal(k_self, (B, SELF_OBS_DIM), jnp.float32)
    obs = jax.random.normal(k_obs, (B, OBS_DIM), jnp.float32)
    params = init_params(k_params, SELF_OBS_DIM, NEIGHBOR_OBS_DIM, H)

    out = quad_neighborhood_attention(
        self_obs, obs, params,
        self_obs_dim=SELF_OBS_DIM,
        neighbor_obs_dim=NEIGHBOR_OBS_DIM,
        neighbor_hidden_size=H,
        num_use_neighbor_obs=N,
        max_rows_per_tile=48,   # force B_blk=8 -> 2-tile grid to exercise pipelining
    )
    out = jax.block_until_ready(out)
    assert out.shape == (B, H)

    ref_bf16 = reference(self_obs, obs, params, SELF_OBS_DIM, NEIGHBOR_OBS_DIM,
                         H, N, matmul_dtype=jnp.bfloat16)
    ref_f32 = reference(self_obs, obs, params, SELF_OBS_DIM, NEIGHBOR_OBS_DIM,
                        H, N)
    assert jnp.allclose(out, ref_bf16, rtol=1e-2, atol=1e-2), "mismatch vs bf16 ref"
    assert jnp.allclose(out, ref_f32, rtol=5e-2, atol=5e-2), "mismatch vs f32 ref"

    print("KERNEL_OK")
</pallas_src>

<mosaic_0001>
module attributes {stable_mosaic.version = 11 : i64} {
  func.func @_mean_kernel(%arg0: i32, %arg1: memref<48x24xbf16, #tpu.memory_space<vmem>>, %arg2: memref<24x32xbf16, #tpu.memory_space<vmem>>, %arg3: memref<1x32xf32, #tpu.memory_space<vmem>>, %arg4: memref<32x32xbf16, #tpu.memory_space<vmem>>, %arg5: memref<1x32xf32, #tpu.memory_space<vmem>>, %arg6: memref<8x32xf32, #tpu.memory_space<vmem>>) attributes {dimension_semantics = [#tpu.dimension_semantics<parallel>], iteration_bounds = array<i64: 2>, scalar_prefetch = 0 : i64, scratch_operands = 0 : i64, tpu.core_type = #tpu.core_type<tc>, window_params = [{transform_indices = @transform_0, window_bounds = array<i64: 48, 24>}, {pipeline_mode = #tpu.pipeline_mode<synchronous>, transform_indices = @transform_1, window_bounds = array<i64: 24, 32>}, {pipeline_mode = #tpu.pipeline_mode<synchronous>, transform_indices = @transform_2, window_bounds = array<i64: 1, 32>}, {pipeline_mode = #tpu.pipeline_mode<synchronous>, transform_indices = @transform_3, window_bounds = array<i64: 32, 32>}, {pipeline_mode = #tpu.pipeline_mode<synchronous>, transform_indices = @transform_4, window_bounds = array<i64: 1, 32>}, {transform_indices = @transform_5, window_bounds = array<i64: 8, 32>}]} {
    %c0 = arith.constant 0 : index
    %c0_0 = arith.constant 0 : index
    %0 = vector.load %arg1[%c0, %c0_0] : memref<48x24xbf16, #tpu.memory_space<vmem>>, vector<48x24xbf16>
    %c0_1 = arith.constant 0 : index
    %c0_2 = arith.constant 0 : index
    %1 = vector.load %arg2[%c0_1, %c0_2] : memref<24x32xbf16, #tpu.memory_space<vmem>>, vector<24x32xbf16>
    %c0_3 = arith.constant 0 : index
    %c0_4 = arith.constant 0 : index
    %2 = vector.load %arg3[%c0_3, %c0_4] : memref<1x32xf32, #tpu.memory_space<vmem>>, vector<1x32xf32>
    %c0_5 = arith.constant 0 : index
    %c0_6 = arith.constant 0 : index
    %3 = vector.load %arg4[%c0_5, %c0_6] : memref<32x32xbf16, #tpu.memory_space<vmem>>, vector<32x32xbf16>
    %c0_7 = arith.constant 0 : index
    %c0_8 = arith.constant 0 : index
    %4 = vector.load %arg5[%c0_7, %c0_8] : memref<1x32xf32, #tpu.memory_space<vmem>>, vector<1x32xf32>
    %cst = arith.constant dense<0.000000e+00> : vector<48x32xf32>
    %5 = tpu.matmul %0, %1, %cst {dimension_numbers = #tpu.dot_dimension_numbers<[1], [0], [0], [1], [0, 0, 1, 1], [], []>} : vector<48x24xbf16>, vector<24x32xbf16>, vector<48x32xf32> -> vector<48x32xf32>
    %6 = vector.broadcast %2 : vector<1x32xf32> to vector<48x32xf32>
    %7 = arith.addf %5, %6 : vector<48x32xf32>
    %8 = math.tanh %7 : vector<48x32xf32>
    %9 = arith.truncf %8 : vector<48x32xf32> to vector<48x32xbf16>
    %cst_9 = arith.constant dense<0.000000e+00> : vector<48x32xf32>
    %10 = tpu.matmul %9, %3, %cst_9 {dimension_numbers = #tpu.dot_dimension_numbers<[1], [0], [0], [1], [0, 0, 1, 1], [], []>} : vector<48x32xbf16>, vector<32x32xbf16>, vector<48x32xf32> -> vector<48x32xf32>
    %11 = vector.broadcast %4 : vector<1x32xf32> to vector<48x32xf32>
    %12 = arith.addf %10, %11 : vector<48x32xf32>
    %13 = math.tanh %12 : vector<48x32xf32>
    %14 = tpu.iota {dimensions = array<i32: 1>} : vector<8x48xi32>
    %15 = tpu.iota {dimensions = array<i32: 0>} : vector<8x48xi32>
    %c6_i32 = arith.constant 6 : i32
    %16 = vector.broadcast %c6_i32 : i32 to vector<8x48xi32>
    %17 = arith.muli %15, %16 : vector<8x48xi32>
    %18 = arith.cmpi sge, %14, %17 : vector<8x48xi32>
    %c6_i32_10 = arith.constant 6 : i32
    %19 = vector.broadcast %c6_i32_10 : i32 to vector<8x48xi32>
    %20 = arith.addi %17, %19 : vector<8x48xi32>
    %21 = arith.cmpi slt, %14, %20 : vector<8x48xi32>
    %22 = arith.andi %18, %21 : vector<8x48xi1>
    %23 = arith.extui %22 : vector<8x48xi1> to vector<8x48xi32>
    %24 = arith.sitofp %23 : vector<8x48xi32> to vector<8x48xf32>
    %cst_11 = arith.constant dense<0.000000e+00> : vector<8x32xf32>
    %25 = tpu.matmul %24, %13, %cst_11 {dimension_numbers = #tpu.dot_dimension_numbers<[1], [0], [0], [1], [0, 0, 1, 1], [], []>} : vector<8x48xf32>, vector<48x32xf32>, vector<8x32xf32> -> vector<8x32xf32>
    %cst_12 = arith.constant 0.166666672 : f32
    %26 = vector.broadcast %cst_12 : f32 to vector<8x32xf32>
    %27 = arith.mulf %25, %26 : vector<8x32xf32>
    %c0_13 = arith.constant 0 : index
    %c0_14 = arith.constant 0 : index
    %28 = vector.load %arg6[%c0_13, %c0_14] : memref<8x32xf32, #tpu.memory_space<vmem>>, vector<8x32xf32>
    tpu.vector_store %arg6[%c0_13, %c0_14], %27 {strides = array<i32>} : memref<8x32xf32, #tpu.memory_space<vmem>>, vector<8x32xf32>,
    return
  }
  func.func @transform_0(%arg0: i32) -> (i32, i32) {
    %c0_i32 = arith.constant 0 : i32
    %c0_i32_0 = arith.constant 0 : i32
    return %arg0, %c0_i32 : i32, i32
  }
  func.func @transform_1(%arg0: i32) -> (i32, i32) {
    %c0_i32 = arith.constant 0 : i32
    %c0_i32_0 = arith.constant 0 : i32
    %c0_i32_1 = arith.constant 0 : i32
    return %c0_i32, %c0_i32_0 : i32, i32
  }
  func.func @transform_2(%arg0: i32) -> (i32, i32) {
    %c0_i32 = arith.constant 0 : i32
    %c0_i32_0 = arith.constant 0 : i32
    %c0_i32_1 = arith.constant 0 : i32
    return %c0_i32, %c0_i32_0 : i32, i32
  }
  func.func @transform_3(%arg0: i32) -> (i32, i32) {
    %c0_i32 = arith.constant 0 : i32
    %c0_i32_0 = arith.constant 0 : i32
    %c0_i32_1 = arith.constant 0 : i32
    return %c0_i32, %c0_i32_0 : i32, i32
  }
  func.func @transform_4(%arg0: i32) -> (i32, i32) {
    %c0_i32 = arith.constant 0 : i32
    %c0_i32_0 = arith.constant 0 : i32
    %c0_i32_1 = arith.constant 0 : i32
    return %c0_i32, %c0_i32_0 : i32, i32
  }
  func.func @transform_5(%arg0: i32) -> (i32, i32) {
    %c0_i32 = arith.constant 0 : i32
    %c0_i32_0 = arith.constant 0 : i32
    return %arg0, %c0_i32 : i32, i32
  }
}

</mosaic_0001>

<bundles_post_ra>
// kernel: tpu_custom_call.1
= control target key start
LH: loop header
LB: loop body
LE: loop exit
PB: predicated region body
PF: predicated region fallthrough
CT: control target
= control target key end

     0   :  { %10 = vsyncpa [#allocation3], 0  ;;  %s801_s0 = inlined_call_operand.vmem [shape: bf16[96,24], index: 0, kind: input, shape index: {}]   ;;  %s802_s1 = inlined_call_operand.vmem [shape: bf16[24,32], index: 1, kind: input, shape index: {}]   ;;  %s803_s2 = inlined_call_operand.vmem [shape: f32[1,32], index: 2, kind: input, shape index: {}]   ;;  %s804_s3 = inlined_call_operand.vmem [shape: bf16[32,32], index: 3, kind: input, shape index: {}]   ;;  %s805_s4 = inlined_call_operand.vmem [shape: f32[1,32], index: 4, kind: input, shape index: {}]   ;;  %s806_s5 = inlined_call_operand.hbm [shape: f32[16,32], index: 5, kind: output, shape index: {}]  }
   0x1   :  { %12 = vsyncpa [#allocation3 + $0x1], 0  ;;  %s695_s18 = smov 0   ;;  %s697_s19 = smov 0  }
   0x2   :  { %s699_s20 = smov 0   ;;  %s701_s21 = smov 0  }
   0x3 LB: > { %s716_s22 = sadd.s32 4294967295, %s662_s21   ;;  %s482_s23 = sadd.s32 4294967294, %s662_s21   ;;  %s662_s21 = sphi %s701_s21, %s812_s21   ;;  %s658_s20 = sphi %s699_s20, %s811_s20   ;;  %s654_s19 = sphi %s697_s19, %s810_s19   ;;  %s650_s18 = sphi %s695_s18, %s809_s18  }
   0x4   : > { %s720_s24 = sadd.s32 1, %s662_s21   ;;  %s135_s25 = sadd.s32 1, %s658_s20 }
   0x5   : > { %s132_s26 = ssub.s32 %s662_s21, %s720_s24  ;;  %p145_p0 = scmp.ne.s32.totalorder %s658_s20, %s654_s19 }
   0x6   : > { %p133_p1 = scmp.eq.s32.totalorder %s132_s26, 0  ;;  %p146_p2 = scmp.eq.s32.totalorder %s716_s22, 1 }
   0x7   : > { %p151_p3 = scmp.ne.s32.totalorder %s654_s19, %s650_s18  ;;  %p152_p4 = scmp.eq.s32.totalorder %s482_s23, 1 }
   0x8   : > { %s731_s27 = scalar_select %p133_p1, %s658_s20, %s135_s25  }
   0x9   : > { %p733_p5 = por %p146_p2, %p145_p0  ;;  %p737_p6 = por %p152_p4, %p151_p3 }
   0xa   : > { %p485_p7 = scmp.ge.s32.totalorder %s662_s21, 1  ;;  %p191_p8 = scmp.lt.s32.totalorder %s662_s21, 3 }
   0xc   : > { %p192_p9 = pnand %p485_p7, %p191_p8 }
   0xd   : > { %s219_s7 = smul.u32 (!%p192_p9), 6, %s716_s22  ;;  %s216_s6 = sand.u32 (!%p192_p9), 1, %s654_s19  }
   0xe   : > { %195 = sbr.rel (%p192_p9) target bundleno = 496 (0x1f0), region = 40  ;;  %s521_s8 = sshll.u32 (!%p192_p9), %s716_s22, 3 }
   0xf   : > { %p220_p10 = scmp.lt.s32.totalorder (!%p192_p9), %s219_s7, 11  ;;  %s418_s11 = scalar_lea.hbm (!%p192_p9), %s806_s5, %s521_s8 }
  0x10   : > { %s422_s14 = sshll.u32 (!%p192_p9), %s418_s11, 4  ;;  %s408_s15 = scalar_lea.sflag (!%p192_p9), [#allocation3], %s216_s6  ;;  %s423_s14 = int_to_ptr.hbm [resolvable:$true] %s422_s14 }
  0x11   : > { %s614_s16 = sshra.s32 (!%p192_p9), %s423_s14, 4  ;;  %s620_s25 = scalar_lea.hbm (!%p192_p9), %s806_s5, 16  ;;  %s615_s16 = int_to_ptr.hbm [resolvable:$true] %s614_s16 }
  0x12   : > { %s616_s17 = scalar_lea.hbm (!%p192_p9), %s615_s16, 8  ;;  %p621_p0 = scmp.lt.s32.totalorder (!%p192_p9), %s615_s16, %s806_s5 }
  0x13   : > { %v234_v0 = vld [vmem:[%s802_s1 + $0x8] sm:$0xf]  ;;  %vm278_vm0 = vcmask 1043456   ;;  %s814_s7 = smov (!%p220_p10, %s219_s7), 11  ;;  %v527_v4 = vld [vmem:[%s802_s1] sm:$0xff]  ;;  %vm268_vm1 = vcmask 195584   ;;  %v370_v36 = vlaneseq  ;;  %p617_p11 = scmp.ne.s32.totalorder %s615_s16, %s616_s17 }
  0x14   : > { %v264_v1 = vunpack.c.l.b16 %v234_v0  ;;  %s487_s10 = sshll.u32 %s814_s7, 2  ;;  %v529_v8 = vld [vmem:[%s804_s3 + $0x8] sm:$0xff]  ;;  %v528_v9 = vld [vmem:[%s804_s3] sm:$0xff]  ;;  %vm330_vm2 = vcmask 261120   ;;  %v664_v55 = vmov 0.0   ;;  %vm381_vm6 = vcmask 392192   ;;  %p622_p1 = scmp.lt.s32.totalorder %s620_s25, %s616_s17 }
  0x15   : > { %s223_s13 = scalar_lea.vmem %s801_s0, %s487_s10  ;;  %346 = vmatpush.bf16.msra.mxu1 %v529_v8  ;;  %532 = vmatpush.bf16.msra.mxu2 %v529_v8  ;;  %v574_v11 = vld [vmem:[%s803_s2] ss:$0 sm:$0xff]  ;;  %v373_v40 = vshrl.u32 %v370_v36, 7  ;;  %v371_v47 = vand.u32 127, %v370_v36  ;;  %s486_s7 = sshll.u32 %s216_s6, 3 }
  0x16   : > { %v266_v2 = vpack.c.b16 %v264_v1, %v264_v1  ;;  %v524_v5 = vld [vmem:[%s223_s13] sm:$0xff]  ;;  %v525_v6 = vld [vmem:[%s223_s13 + $0x8] sm:$0xff]  ;;  %v526_v7 = vld [vmem:[%s223_s13 + $0x10] sm:$0xff]  ;;  %s218_s12 = scalar_lea.vmem [#allocation2], %s486_s7  ;;  %p618_p12 = pnand %p617_p11, %p733_p5 }
  0x17   : > { %v575_v37 = vld [vmem:[%s805_s4] ss:$0 sm:$0xff]  ;;  %v374_v44 = vmul.u32 6, %v373_v40  ;;  %s420_s13 = sshll.u32 %s218_s12, 4  ;;  %p623_p2 = por %p622_p1, %p621_p0  ;;  %s421_s13 = int_to_ptr.vmem [resolvable:$true] %s420_s13 }
  0x18   : > { %v280_v3 = vsel %vm278_vm0, %v266_v2, 0  ;;  %p619_p13 = pneg %p618_p12 }
  0x19   : > { %288 = vmatpush.bf16.msra.mxu0 %v280_v3  ;;  %530 = vmatpush.bf16.msra.mxu3 %v280_v3  ;;  %v376_v48 = vadd.s32 6, %v374_v44  ;;  %vm375_vm3 = vcmp.ge.s32.totalorder %v371_v47, %v374_v44 }
  0x1a   : > { %347 = vmatpush.bf16.msra.mxu1 %v528_v9  ;;  %533 = vmatpush.bf16.msra.mxu2 %v528_v9  ;;  %p624_p3 = pnand %p623_p2, %p619_p13 }
  0x1b   : > { %vm377_vm4 = vcmp.lt.s32.totalorder %v371_v47, %v376_v48 }
  0x1c   : > { %vm378_vm5 = vmand %vm375_vm3, %vm377_vm4 }
  0x1d   : > { %289 = vmatpush.bf16.msra.mxu0 %v527_v4  ;;  %531 = vmatpush.bf16.msra.mxu3 %v527_v4  ;;  %v518_v56 = vsel %vm378_vm5, 1.0, %v664_v55 }
  0x20   : > { %504 = vmatmul.msk.bf16.vlgmr.msra.gmra.mxu0 %vm268_vm1, %v524_v5  ;;  %505 = vmatmul.msk.bf16.vlgmr.msra.gmra.mxu3 %vm268_vm1, %v525_v6 }
  0x30   : > { %506 = vmatmul.msk.bf16.gmra.mxu3 %vm268_vm1, %v526_v7 }
  0x9d   : > { %v291_v10 = vpop.f32.mrf.mxu0 }
  0x9e   : > { %v292_v12 = vadd.f32 %v574_v11, %v291_v10 }
  0xa0   : > { %576 = vtanh.f32 %v292_v12 }
  0xa3   : > { %v296_v13 = vpop.f32.mrf.mxu3 }
  0xa4   : > { %v297_v22 = vadd.f32 %v574_v11, %v296_v13 }
  0xa5   : > { %v293_v14 = vpop.f32.mrf.mxu0 }
  0xa6   : > { %v294_v15 = vadd.f32 %v574_v11, %v293_v14  ;;  %v577_v17 = vpop.eup %576 }
  0xa8   : > { %578 = vtanh.f32 %v294_v15 }
  0xab   : > { %v298_v16 = vpop.f32.mrf.mxu3 }
  0xac   : > { %v299_v20 = vadd.f32 %v574_v11, %v298_v16 }
  0xae   : > { %v579_v18 = vpop.eup %578  ;;  %580 = vtanh.f32 %v299_v20 }
  0xaf   : > { %v312_v19 = vpack.c.bf16 %v579_v18, %v577_v17  ;;  %582 = vtanh.f32 %v297_v22 }
  0xb1   : > { %515 = vmatmul.msk.bf16.vlgmr.msra.gmra.mxu1 %vm330_vm2, %v312_v19 }
  0xb3   : > { %v301_v21 = vpop.f32.mrf.mxu3 }
  0xb4   : > { %v302_v23 = vadd.f32 %v574_v11, %v301_v21  ;;  %v581_v25 = vpop.eup %580 }
  0xb5   : > { %v583_v27 = vpop.eup %582 }
  0xb6   : > { %584 = vtanh.f32 %v302_v23  ;;  %v313_v28 = vpack.c.bf16 %v581_v25, %v583_v27 }
  0xbb   : > { %v303_v24 = vpop.f32.mrf.mxu3 }
  0xbc   : > { %v304_v26 = vadd.f32 %v574_v11, %v303_v24  ;;  %v585_v29 = vpop.eup %584 }
  0xbe   : > { %586 = vtanh.f32 %v304_v26 }
  0xc1   : > { %516 = vmatmul.msk.bf16.gmra.mxu1 %vm330_vm2, %v313_v28 }
  0xc4   : > { %v587_v30 = vpop.eup %586 }
  0xc5   : > { %v314_v31 = vpack.c.bf16 %v587_v30, %v585_v29 }
  0xc7   : > { %517 = vmatmul.msk.bf16.vlgmr.msra.gmra.mxu2 %vm330_vm2, %v314_v31 }
 0x12e   : > { %v349_v32 = vpop.f32.mrf.mxu1 }
 0x12f   : > { %v350_v50 = vadd.f32 %v575_v37, %v349_v32 }
 0x136   : > { %v351_v33 = vpop.f32.mrf.mxu1 }
 0x137   : > { %v352_v46 = vadd.f32 %v575_v37, %v351_v33 }
 0x13e   : > { %v354_v34 = vpop.f32.mrf.mxu1 }
 0x13f   : > { %v355_v45 = vadd.f32 %v575_v37, %v354_v34 }
 0x146   : > { %v356_v38 = vpop.f32.mrf.mxu1 }
 0x147   : > { %v357_v43 = vadd.f32 %v575_v37, %v356_v38 }
 0x14a   : > { %v359_v35 = vpop.f32.mrf.mxu2 }
 0x14b   : > { %v360_v41 = vadd.f32 %v575_v37, %v359_v35 }
 0x152   : > { %v361_v39 = vpop.f32.mrf.mxu2 }
 0x153   : > { %v362_v42 = vadd.f32 %v575_v37, %v361_v39 }
 0x155   : > { %588 = vtanh.f32 %v362_v42 }
 0x156   : > { %590 = vtanh.f32 %v360_v41 }
 0x157   : > { %592 = vtanh.f32 %v357_v43 }
 0x158   : > { %594 = vtanh.f32 %v355_v45 }
 0x159   : > { %596 = vtanh.f32 %v352_v46 }
 0x15a   : > { %598 = vtanh.f32 %v350_v50 }
 0x15b   : > { %v589_v49 = vpop.eup %588 }
 0x15c   : > { %395 = vmatpush.msrb.mxu2 %v589_v49  ;;  %v591_v51 = vpop.eup %590 }
 0x15d   : > { %v593_v52 = vpop.eup %592 }
 0x15e   : > { %396 = vmatpush.msrb.mxu2 %v591_v51  ;;  %v595_v53 = vpop.eup %594 }
 0x15f   : > { %v597_v54 = vpop.eup %596 }
 0x160   : > { %397 = vmatpush.msrb.mxu2 %v593_v52  ;;  %v599_v57 = vpop.eup %598 }
 0x162   : > { %398 = vmatpush.msrb.mxu2 %v595_v53 }
 0x164   : > { %399 = vmatpush.msrb.mxu2 %v597_v54 }
 0x166   : > { %400 = vmatpush.msrb.mxu2 %v599_v57 }
 0x167   : > { %519 = vmatmul.msk.f32.vlgmr.msrb.gmra.mxu2 %vm381_vm6, %v518_v56 }
 0x1ea   : > { %v402_v58 = vpop.f32.mrf.mxu2 }
 0x1eb   : > { %v405_v59 = vmul.f32 0.16666667, %v402_v58 }
 0x1ed   : > { %406 = vst.msk [vmem:[%s218_s12] sm:$0xff] %vm330_vm2, %v405_v59 }
 0x1ee   : > { %627 = shalt.err (!%p624_p3)
}
 0x1ef   : > { %534 = dma.vmem_to_hbm [thread:$0]  (%p733_p5), %s421_s13, 128, %s423_s14, %s408_s15  }
 0x1f0 PF: > { %p540_p4 = scmp.ge.s32.totalorder %s662_s21, 2  ;;  %s434_s6 = sand.u32 1, %s650_s18  }
 0x1f1   : > { %s435_s7 = scalar_lea.sflag [#allocation3], %s434_s6 }
 0x1f2   : > { %p537_p7 = pnand %p540_p4, %p737_p6 }
 0x1f4   : > { %p538_p8 = pneg %p537_p7 }
 0x1f6   : > { %645 = dma.done.wait (%p538_p8), %s435_s7, 128  }
 0x1f7   : > { %647 = vsyncadd (%p538_p8), %s435_s7, 4294967168  ;;  %p15_p9 = scmp.ge.s32.totalorder %s720_s24, 4   ;;  %s809_s18 = smov %s654_s19 }
 0x1f8   : > { %s810_s19 = smov %s658_s20  ;;  %s811_s20 = smov %s731_s27 }
 0x1f9   : > { %s812_s21 = smov %s720_s24  ;;  %17 = sbr.rel (!%p15_p9) target bundleno = 3 (0x3), region = 75 }
 0x1fe   :  { %441 = vsyncpa [#allocation3], 1 }
 0x1ff   :  { %443 = vsyncpa [#allocation3 + $0x1], 1 }

</bundles_post_ra>
